<compile_context>
chip_gen: v7x
topology: tpu7x:2x2x1
jax: 0.10.0
libtpu: 0.0.40
codegen_flags: <defaults>
</compile_context>

<pallas_src>
import math
import functools

import jax
import jax.numpy as jnp
from jax import lax
from jax.experimental import pallas as pl
from jax.experimental.pallas import tpu as pltpu


def make_pos_encoding(max_len: int, dim_model: int, dtype=jnp.float32):
    """Deterministic buffer identical to the PyTorch __init__ (shape (max_len, 1, dim_model))."""
    positions = jnp.arange(max_len, dtype=jnp.float32)[:, None]                # (L, 1)
    division = jnp.exp(
        jnp.arange(0, dim_model, 2, dtype=jnp.float32) * (-math.log(10000.0) / dim_model)
    )                                                                          # (D/2,)
    pe = jnp.zeros((max_len, dim_model), dtype=jnp.float32)
    pe = pe.at[:, 0::2].set(jnp.sin(positions * division))
    pe = pe.at[:, 1::2].set(jnp.cos(positions * division))
    # unsqueeze(0).transpose(0, 1) -> (max_len, 1, dim_model)
    return pe[:, None, :].astype(dtype)


def _pos_enc_kernel(seed_ref, x_ref, pe_ref, o_ref, *, dropout_p: float):
    # x_ref/o_ref : (tS, B, D) in VMEM, pe_ref : (tS, D) in VMEM, seed_ref : (1,) int32 in SMEM
    tS, B, D = x_ref.shape
    x = x_ref[...]
    pe = pe_ref[...].astype(x.dtype)
    y = x + pe[:, None, :]                     # sublane-broadcast over the batch axis

    if dropout_p > 0.0:
        # Counter-based RNG keyed on (seed, global element index).  Tiling-invariant
        # (a different block_rows gives the identical mask) and uses only portable
        # integer ops, so it runs under Mosaic on TPU and under interpret mode.
        row0 = (pl.program_id(0) * tS).astype(jnp.uint32)
        r = lax.broadcasted_iota(jnp.uint32, (tS, B, D), 0)
        b = lax.broadcasted_iota(jnp.uint32, (tS, B, D), 1)
        d = lax.broadcasted_iota(jnp.uint32, (tS, B, D), 2)
        idx = ((row0 + r) * jnp.uint32(B) + b) * jnp.uint32(D) + d
        h = idx ^ seed_ref[0].astype(jnp.uint32)
        # murmur3 finalizer (full avalanche on sequential counters)
        h = h ^ (h >> jnp.uint32(16))
        h = h * jnp.uint32(0x85EBCA6B)
        h = h ^ (h >> jnp.uint32(13))
        h = h * jnp.uint32(0xC2B2AE35)
        h = h ^ (h >> jnp.uint32(16))
        # Integer-threshold compare: P(keep) = 1 - dropout_p exactly (mod 2^-32).
        thresh = jnp.uint32(min((1 << 32) - 1, int(round(dropout_p * (1 << 32)))))
        keep = h >= thresh
        scale = jnp.asarray(1.0 / (1.0 - dropout_p), dtype=y.dtype)
        y = jnp.where(keep, y * scale, jnp.zeros_like(y))

    o_ref[...] = y.astype(o_ref.dtype)


def _choose_block_rows(S: int, B: int, D: int, itemsize: int,
                       budget_bytes: int = 4 << 20) -> int:
    """Largest row-tile (multiple of 8, dividing S) whose x + out + pe tiles,
    double-buffered by the pipeline, stay within a small VMEM budget
    (comfortably under v7x's 64 MiB physical / 32 MiB default-scoped VMEM)."""
    if S % 8 != 0:
        return S                                   # single full-extent block
    row_bytes = (2 * B * D + D) * itemsize         # x row + out row + pe row
    max_rows = max(8, ((budget_bytes // (2 * row_bytes)) // 8) * 8)  # /2: double buffer
    t = min(S, max_rows)
    t -= t % 8
    t = max(t, 8)
    while t > 8 and S % t != 0:
        t -= 8
    if S % t != 0:
        t = S
    return t


def positional_encoding_forward(x, pos_encoding, *, dropout_p: float,
                                training: bool, seed: int = 0,
                                block_rows: int | None = None):
    """x: (seq_len, batch, dim_model); pos_encoding: (max_len, 1, dim_model)."""
    S, B, D = x.shape
    pe2d = pos_encoding[:S, 0, :]                  # (S, D): sublane-dense PE table
    p = float(dropout_p) if training else 0.0      # eval -> identity dropout
    seed_arr = jnp.asarray([seed], dtype=jnp.int32)

    if block_rows is None:
        block_rows = _choose_block_rows(S, B, D, x.dtype.itemsize)
    tS = int(block_rows)
    assert S % tS == 0, "block_rows must divide seq_len"
    grid = (S // tS,)

    kernel = functools.partial(_pos_enc_kernel, dropout_p=p)
    return pl.pallas_call(
        kernel,
        out_shape=jax.ShapeDtypeStruct((S, B, D), x.dtype),
        grid=grid,
        in_specs=[
            pl.BlockSpec(memory_space=pltpu.MemorySpace.SMEM),       # seed scalar
            pl.BlockSpec((tS, B, D), lambda i: (i, 0, 0)),           # token embeddings
            pl.BlockSpec((tS, D), lambda i: (i, 0)),                 # positional encoding
        ],
        out_specs=pl.BlockSpec((tS, B, D), lambda i: (i, 0, 0)),
        compiler_params=pltpu.CompilerParams(
            dimension_semantics=("parallel",),                       # 2 TCs on v7x
        ),
    )(seed_arr, x, pe2d)


if __name__ == "__main__":
    dim_model = 128      # lane-dense (multiple of 128)
    max_len = 64
    seq_len = 32
    batch = 8            # sublane-dense (multiple of 8)
    dropout_p = 0.1

    key = jax.random.PRNGKey(0)
    x = jax.random.normal(key, (seq_len, batch, dim_model), dtype=jnp.float32)
    pos_encoding = make_pos_encoding(max_len, dim_model)

    ref = x + pos_encoding[:seq_len]

    # Eval-mode forward (dropout = identity): check against the pure-JAX reference.
    y_eval = positional_encoding_forward(x, pos_encoding, dropout_p=dropout_p,
                                         training=False)
    y_eval = jax.block_until_ready(y_eval)
    assert y_eval.shape == (seq_len, batch, dim_model)
    assert jnp.allclose(y_eval, ref, atol=1e-6, rtol=1e-6)

    # Training-mode forward (stochastic inverted dropout inside the kernel),
    # forcing a multi-tile grid (grid = (4,)) to exercise the tiled path.
    y_train = positional_encoding_forward(x, pos_encoding, dropout_p=dropout_p,
                                          training=True, seed=1234, block_rows=8)
    y_train = jax.block_until_ready(y_train)
    assert y_train.shape == (seq_len, batch, dim_model)
    # every surviving element equals (x + pe) / (1 - p), dropped elements are 0
    scaled = ref / (1.0 - dropout_p)
    kept_ok = jnp.isclose(y_train, scaled, atol=1e-5, rtol=1e-5)
    dropped = y_train == 0.0
    assert bool(jnp.all(jnp.logical_or(kept_ok, dropped)))
    drop_rate = float(jnp.mean(dropped.astype(jnp.float32)))
    assert 0.02 < drop_rate < 0.30, f"suspicious drop rate {drop_rate}"

    print("KERNEL_OK")
</pallas_src>

<mosaic_0001>
module attributes {stable_mosaic.version = 11 : i64} {
  func.func @_pos_enc_kernel(%arg0: i32, %arg1: memref<1xi32, #tpu.memory_space<smem>>, %arg2: memref<32x8x128xf32, #tpu.memory_space<vmem>>, %arg3: memref<32x128xf32, #tpu.memory_space<vmem>>, %arg4: memref<32x8x128xf32, #tpu.memory_space<vmem>>) attributes {dimension_semantics = [#tpu.dimension_semantics<parallel>], iteration_bounds = array<i64: 1>, scalar_prefetch = 0 : i64, scratch_operands = 0 : i64, tpu.core_type = #tpu.core_type<tc>, window_params = [{transform_indices = @transform_0, window_bounds = array<i64: 1>}, {transform_indices = @transform_1, window_bounds = array<i64: 32, 8, 128>}, {transform_indices = @transform_2, window_bounds = array<i64: 32, 128>}, {transform_indices = @transform_3, window_bounds = array<i64: 32, 8, 128>}]} {
    %c0 = arith.constant 0 : index
    %c0_0 = arith.constant 0 : index
    %c0_1 = arith.constant 0 : index
    %0 = vector.load %arg2[%c0, %c0_0, %c0_1] : memref<32x8x128xf32, #tpu.memory_space<vmem>>, vector<32x8x128xf32>
    %c0_2 = arith.constant 0 : index
    %c0_3 = arith.constant 0 : index
    %1 = vector.load %arg3[%c0_2, %c0_3] : memref<32x128xf32, #tpu.memory_space<vmem>>, vector<32x128xf32>
    %2 = vector.shape_cast %1 : vector<32x128xf32> to vector<32x1x128xf32>
    %3 = vector.broadcast %2 : vector<32x1x128xf32> to vector<32x8x128xf32>
    %4 = arith.addf %0, %3 : vector<32x8x128xf32>
    %c0_4 = arith.constant 0 : index
    %c0_5 = arith.constant 0 : index
    %c0_6 = arith.constant 0 : index
    %5 = vector.load %arg4[%c0_4, %c0_5, %c0_6] : memref<32x8x128xf32, #tpu.memory_space<vmem>>, vector<32x8x128xf32>
    tpu.vector_store %arg4[%c0_4, %c0_5, %c0_6], %4 {strides = array<i32>} : memref<32x8x128xf32, #tpu.memory_space<vmem>>, vector<32x8x128xf32>,
    return
  }
  func.func @transform_0(%arg0: i32) -> i32 {
    %c0_i32 = arith.constant 0 : i32
    %c0_i32_0 = arith.constant 0 : i32
    return %c0_i32 : i32
  }
  func.func @transform_1(%arg0: i32) -> (i32, i32, i32) {
    %c0_i32 = arith.constant 0 : i32
    %c0_i32_0 = arith.constant 0 : i32
    %c0_i32_1 = arith.constant 0 : i32
    return %arg0, %c0_i32, %c0_i32_0 : i32, i32, i32
  }
  func.func @transform_2(%arg0: i32) -> (i32, i32) {
    %c0_i32 = arith.constant 0 : i32
    %c0_i32_0 = arith.constant 0 : i32
    return %arg0, %c0_i32 : i32, i32
  }
  func.func @transform_3(%arg0: i32) -> (i32, i32, i32) {
    %c0_i32 = arith.constant 0 : i32
    %c0_i32_0 = arith.constant 0 : i32
    %c0_i32_1 = arith.constant 0 : i32
    return %arg0, %c0_i32, %c0_i32_0 : i32, i32, i32
  }
}

</mosaic_0001>

<bundles_post_ra>
// kernel: tpu_custom_call.1
= control target key start
LH: loop header
LB: loop body
LE: loop exit
PB: predicated region body
PF: predicated region fallthrough
CT: control target
= control target key end

     0   :  { %9 = vsyncpa [#allocation4], 0  ;;  %s735_s0 = inlined_call_operand.<no memory space> [shape: s32[1], index: 0, kind: input, shape index: {}]   ;;  %s736_s1 = inlined_call_operand.hbm [shape: f32[32,8,128], index: 1, kind: input, shape index: {}]   ;;  %s737_s2 = inlined_call_operand.hbm [shape: f32[32,128], index: 2, kind: input, shape index: {}]   ;;  %s738_s3 = inlined_call_operand.hbm [shape: f32[32,8,128], index: 3, kind: output, shape index: {}]  }
   0x1   :  { %10 = vsyncpa [#allocation7], 0 }
   0x2   :  { %11 = vsyncpa [#allocation5], 0  ;;  %s604_s12 = smov [#allocation3]   ;;  %s532_s16 = scalar_lea.hbm %s736_s1, 4096 }
   0x3   :  { %s19_s13 = sshll.u32 %s604_s12, 4  ;;  %p533_p0 = scmp.ne.s32.totalorder %s736_s1, %s532_s16  ;;  %s20_s13 = int_to_ptr.vmem [resolvable:$true] %s19_s13 }
   0x4   :  { %p536_p1 = scmp.lt.u32.totalorder %s532_s16, %s736_s1 }
   0x6   :  { %p538_p2 = pnand %p536_p1, %p533_p0 }
   0x8   :  { %541 = shalt.err (!%p538_p2)
}
   0x9   :  { %s542_s20 = scalar_lea.vmem %s20_s13, 4096  ;;  %p547_p4 = scmp.lt.s32.totalorder %s20_s13, %s20_s13 }
   0xa   :  { %p543_p3 = scmp.ne.s32.totalorder %s20_s13, %s542_s20  ;;  %p548_p5 = scmp.lt.s32.totalorder %s542_s20, %s542_s20 }
   0xc   :  { %p549_p6 = por %p548_p5, %p547_p4 }
   0xe   :  { %p550_p7 = pnand %p549_p6, %p543_p3 }
  0x10   :  { %553 = shalt.err (!%p550_p7)
}
  0x11   :  { %s605_s21 = smov 128   ;;  %s606_s22 = smov 8  }
  0x12   :  { %25 = dma.hbm_to_vmem [thread:$0]  %s736_s1, 4096, %s20_s13, [#allocation4], %s605_s21, %s605_s21, %s606_s22  }
  0x13   :  { %s607_s25 = smov [#allocation6]   ;;  %s554_s29 = scalar_lea.hbm %s737_s2, 512 }
  0x14   :  { %s31_s26 = sshll.u32 %s607_s25, 4  ;;  %p555_p8 = scmp.ne.s32.totalorder %s737_s2, %s554_s29  ;;  %s32_s26 = int_to_ptr.vmem [resolvable:$true] %s31_s26 }
  0x15   :  { %p558_p9 = scmp.lt.u32.totalorder %s554_s29, %s737_s2 }
  0x17   :  { %p560_p10 = pnand %p558_p9, %p555_p8 }
  0x19   :  { %563 = shalt.err (!%p560_p10)
}
  0x1a   :  { %s564_s7 = scalar_lea.vmem %s32_s26, 512  ;;  %p569_p12 = scmp.lt.s32.totalorder %s32_s26, %s32_s26 }
  0x1b   :  { %p565_p11 = scmp.ne.s32.totalorder %s32_s26, %s564_s7  ;;  %p570_p13 = scmp.lt.s32.totalorder %s564_s7, %s564_s7 }
  0x1d   :  { %p571_p0 = por %p570_p13, %p569_p12 }
  0x1f   :  { %p572_p1 = pnand %p571_p0, %p565_p11 }
  0x21   :  { %575 = shalt.err (!%p572_p1)
}
  0x22   :  { %37 = dma.hbm_to_vmem [thread:$0]  %s737_s2, 512, %s32_s26, [#allocation7], %s605_s21, %s605_s21, %s606_s22  }
  0x23   :  { %598 = dma.done.wait [#allocation4], 4096  }
  0x24   :  { %599 = vsyncadd [#allocation4], 4294963200 }
  0x25   :  { %600 = dma.done.wait [#allocation7], 512  }
  0x26   :  { %601 = vsyncadd [#allocation7], 4294966784  ;;  %v88_v0 = vlaneseq  ;;  %v608_v1 = vmov 1966171168   ;;  %v76_v6 = vld [vmem:[#allocation6] sm:$0xff]  ;;  %v77_v13 = vld [vmem:[#allocation6 + $0x8] sm:$0xff] }
  0x27   :  { %v86_v2 = vunpack.c.l.s4 %v608_v1  ;;  %v84_v9 = vcombine.high %v76_v6, %v76_v6  ;;  %v44_v14 = vld [vmem:[#allocation3] sm:$0xff]  ;;  %v133_v16 = vcombine.high %v77_v13, %v77_v13  ;;  %v45_v21 = vld [vmem:[#allocation3 + $0x8] sm:$0xff]  ;;  %v46_v22 = vld [vmem:[#allocation3 + $0x10] sm:$0xff]  ;;  %s609_s2 = smov [#allocation8]  }
  0x28   :  { %v89_v3 = vshrl.u32 %v88_v0, 7  ;;  %v48_v31 = vld [vmem:[#allocation3 + $0x20] sm:$0xff]  ;;  %v47_v32 = vld [vmem:[#allocation3 + $0x18] sm:$0xff]  ;;  %v49_v41 = vld [vmem:[#allocation3 + $0x28] sm:$0xff]  ;;  %s509_s9 = sshll.u32 %s609_s2, 4  ;;  %s510_s9 = int_to_ptr.vmem [resolvable:$true] %s509_s9 }
  0x29   :  { %v87_v4 = vunpack.c.0.s8 %v86_v2  ;;  %v52_v36 = vld [vmem:[#allocation3 + $0x40] sm:$0xff]  ;;  %v50_v42 = vld [vmem:[#allocation3 + $0x30] sm:$0xff]  ;;  %v53_v48 = vld [vmem:[#allocation3 + $0x48] sm:$0xff]  ;;  %s576_s10 = scalar_lea.vmem %s510_s9, 4096  ;;  %p581_p3 = scmp.lt.s32.totalorder %s510_s9, %s510_s9 }
  0x2a   :  { %v663_v8 = vsub.s32 0, %v89_v3  ;;  %v51_v50 = vld [vmem:[#allocation3 + $0x38] sm:$0xff]  ;;  %v78_v54 = vld [vmem:[#allocation6 + $0x10] sm:$0xff]  ;;  %p577_p2 = scmp.ne.s32.totalorder %s510_s9, %s576_s10  ;;  %p582_p4 = scmp.lt.s32.totalorder %s576_s10, %s576_s10 }
  0x2b   :  { %v660_v5 = vsub.s32 %v87_v4, %v89_v3  ;;  %v54_v58 = vld [vmem:[#allocation3 + $0x50] sm:$0xff]  ;;  %v55_v62 = vld [vmem:[#allocation3 + $0x58] sm:$0xff]  ;;  %v56_v3 = vld [vmem:[#allocation3 + $0x60] sm:$0xff] }
  0x2c   :  { %p583_p5 = por %p582_p4, %p581_p3 }
  0x2d   :  { %v91_v7 = vrot.slane %v76_v6, %v660_v5  ;;  %v98_v12 = vrot.slane %v84_v9, %v660_v5  ;;  %v140_v15 = vrot.slane %v77_v13, %v660_v5  ;;  %v147_v26 = vrot.slane %v133_v16, %v660_v5  ;;  %v57_v13 = vld [vmem:[#allocation3 + $0x68] sm:$0xff] }
  0x2e   :  { %v189_v4 = vrot.slane %v78_v54, %v660_v5  ;;  %v182_v6 = vcombine.high %v78_v54, %v78_v54  ;;  %p584_p6 = pnand %p583_p5, %p577_p2 }
  0x2f   :  { %v107_v10 = vrot.slane %v91_v7, %v660_v5  ;;  %v99_v11 = vcombine.high %v91_v7, %v91_v7  ;;  %v114_v20 = vrot.slane %v98_v12, %v660_v5  ;;  %v100_v23 = vcombine.high %v98_v12, %v98_v12 }
  0x30   :  { %v156_v24 = vrot.slane %v140_v15, %v660_v5  ;;  %v148_v25 = vcombine.high %v140_v15, %v140_v15  ;;  %v163_v63 = vrot.slane %v147_v26, %v660_v5  ;;  %v149_v0 = vcombine.high %v147_v26, %v147_v26 }
  0x31   :  { %v283_v17 = vrot.slane %v107_v10, %v663_v8  ;;  %v121_v18 = vrot.slane %v99_v11, %v660_v5  ;;  %v129_v19 = vcombine.high %v107_v10, %v107_v10  ;;  %v299_v33 = vrot.slane %v114_v20, %v663_v8 }
  0x32   :  { %v128_v34 = vrot.slane %v100_v23, %v660_v5  ;;  %v130_v35 = vcombine.high %v114_v20, %v114_v20  ;;  %v315_v37 = vrot.slane %v156_v24, %v663_v8  ;;  %v170_v43 = vrot.slane %v148_v25, %v660_v5  ;;  %v59_v23 = vld [vmem:[#allocation3 + $0x78] sm:$0xff] }
  0x33   :  { %v440_v27 = vadd.f32 %v283_v17, %v44_v14  ;;  %v287_v28 = vrot.slane %v121_v18, %v663_v8  ;;  %v291_v29 = vrot.slane %v129_v19, %v663_v8  ;;  %v131_v30 = vcombine.high %v121_v18, %v121_v18  ;;  %v58_v14 = vld [vmem:[#allocation3 + $0x70] sm:$0xff] }
  0x34   :  { %v444_v44 = vadd.f32 %v299_v33, %v48_v31  ;;  %v303_v45 = vrot.slane %v128_v34, %v663_v8  ;;  %v307_v46 = vrot.slane %v130_v35, %v663_v8  ;;  %v132_v47 = vcombine.high %v128_v34, %v128_v34  ;;  %v61_v31 = vld [vmem:[#allocation3 + $0x88] sm:$0xff] }
  0x35   :  { %472 = vst [vmem:[#allocation8] sm:$0xff] %v440_v27  ;;  %v441_v38 = vadd.f32 %v287_v28, %v45_v21  ;;  %v442_v39 = vadd.f32 %v291_v29, %v46_v22  ;;  %v295_v40 = vrot.slane %v131_v30, %v663_v8  ;;  %v448_v51 = vadd.f32 %v315_v37, %v52_v36  ;;  %v60_v22 = vld [vmem:[#allocation3 + $0x80] sm:$0xff] }
  0x36   :  { %v319_v52 = vrot.slane %v170_v43, %v663_v8  ;;  %v178_v53 = vcombine.high %v156_v24, %v156_v24  ;;  %476 = vst [vmem:[#allocation8 + $0x20] sm:$0xff] %v444_v44  ;;  %v445_v55 = vadd.f32 %v303_v45, %v49_v41  ;;  %v446_v56 = vadd.f32 %v307_v46, %v50_v42  ;;  %v79_v44 = vld [vmem:[#allocation6 + $0x18] sm:$0xff] }
  0x37   :  { %473 = vst [vmem:[#allocation8 + $0x8] sm:$0xff] %v441_v38  ;;  %474 = vst [vmem:[#allocation8 + $0x10] sm:$0xff] %v442_v39  ;;  %v443_v49 = vadd.f32 %v295_v40, %v47_v32  ;;  %v311_v57 = vrot.slane %v132_v47, %v663_v8  ;;  %v180_v59 = vcombine.high %v170_v43, %v170_v43  ;;  %v62_v32 = vld [vmem:[#allocation3 + $0x90] sm:$0xff]  ;;  %v64_v38 = vld [vmem:[#allocation3 + $0xa0] sm:$0xff] }
  0x38   :  { %480 = vst [vmem:[#allocation8 + $0x40] sm:$0xff] %v448_v51  ;;  %v449_v60 = vadd.f32 %v319_v52, %v53_v48  ;;  %v323_v61 = vrot.slane %v178_v53, %v663_v8  ;;  %477 = vst [vmem:[#allocation8 + $0x28] sm:$0xff] %v445_v55  ;;  %v331_v9 = vrot.slane %v163_v63, %v663_v8  ;;  %v63_v40 = vld [vmem:[#allocation3 + $0x98] sm:$0xff]  ;;  %v65_v48 = vld [vmem:[#allocation3 + $0xa8] sm:$0xff] }
  0x39   :  { %475 = vst [vmem:[#allocation8 + $0x18] sm:$0xff] %v443_v49  ;;  %478 = vst [vmem:[#allocation8 + $0x30] sm:$0xff] %v446_v56  ;;  %v447_v1 = vadd.f32 %v311_v57, %v51_v50  ;;  %v327_v2 = vrot.slane %v180_v59, %v663_v8  ;;  %v177_v10 = vrot.slane %v149_v0, %v660_v5  ;;  %v66_v49 = vld [vmem:[#allocation3 + $0xb0] sm:$0xff]  ;;  %v67_v56 = vld [vmem:[#allocation3 + $0xb8] sm:$0xff] }
  0x3a   :  { %481 = vst [vmem:[#allocation8 + $0x48] sm:$0xff] %v449_v60  ;;  %v450_v7 = vadd.f32 %v323_v61, %v54_v58  ;;  %v179_v11 = vcombine.high %v163_v63, %v163_v63  ;;  %v205_v15 = vrot.slane %v189_v4, %v660_v5  ;;  %v197_v16 = vcombine.high %v189_v4, %v189_v4  ;;  %v68_v63 = vld [vmem:[#allocation3 + $0xc0] sm:$0xff] }
  0x3b   :  { %479 = vst [vmem:[#allocation8 + $0x38] sm:$0xff] %v447_v1  ;;  %v451_v12 = vadd.f32 %v327_v2, %v55_v62  ;;  %v196_v17 = vrot.slane %v182_v6, %v660_v5  ;;  %v452_v18 = vadd.f32 %v331_v9, %v56_v3  ;;  %v335_v19 = vrot.slane %v177_v10, %v663_v8  ;;  %v69_v6 = vld [vmem:[#allocation3 + $0xc8] sm:$0xff] }
  0x3c   :  { %482 = vst [vmem:[#allocation8 + $0x50] sm:$0xff] %v450_v7  ;;  %v339_v20 = vrot.slane %v179_v11, %v663_v8  ;;  %v181_v21 = vcombine.high %v177_v10, %v177_v10  ;;  %v347_v24 = vrot.slane %v205_v15, %v663_v8  ;;  %v219_v25 = vrot.slane %v197_v16, %v660_v5  ;;  %v70_v7 = vld [vmem:[#allocation3 + $0xd0] sm:$0xff] }
  0x3d   :  { %483 = vst [vmem:[#allocation8 + $0x58] sm:$0xff] %v451_v12  ;;  %v227_v26 = vcombine.high %v205_v15, %v205_v15  ;;  %v212_v27 = vrot.slane %v196_v17, %v660_v5  ;;  %484 = vst [vmem:[#allocation8 + $0x60] sm:$0xff] %v452_v18  ;;  %v453_v28 = vadd.f32 %v335_v19, %v57_v13  ;;  %v71_v13 = vld [vmem:[#allocation3 + $0xd8] sm:$0xff]  ;;  %v72_v19 = vld [vmem:[#allocation3 + $0xe0] sm:$0xff] }
  0x3e   :  { %v454_v29 = vadd.f32 %v339_v20, %v58_v14  ;;  %v343_v30 = vrot.slane %v181_v21, %v663_v8  ;;  %v198_v33 = vcombine.high %v196_v17, %v196_v17  ;;  %v456_v34 = vadd.f32 %v347_v24, %v60_v22  ;;  %v73_v24 = vld [vmem:[#allocation3 + $0xe8] sm:$0xff] }
  0x3f   :  { %v351_v35 = vrot.slane %v219_v25, %v663_v8  ;;  %v355_v36 = vrot.slane %v227_v26, %v663_v8  ;;  %v229_v37 = vcombine.high %v219_v25, %v219_v25  ;;  %485 = vst [vmem:[#allocation8 + $0x68] sm:$0xff] %v453_v28  ;;  %v363_v41 = vrot.slane %v212_v27, %v663_v8  ;;  %v74_v25 = vld [vmem:[#allocation3 + $0xf0] sm:$0xff] }
  0x40   :  { %486 = vst [vmem:[#allocation8 + $0x70] sm:$0xff] %v454_v29  ;;  %v455_v39 = vadd.f32 %v343_v30, %v59_v23  ;;  %v226_v42 = vrot.slane %v198_v33, %v660_v5  ;;  %v228_v43 = vcombine.high %v212_v27, %v212_v27  ;;  %488 = vst [vmem:[#allocation8 + $0x80] sm:$0xff] %v456_v34  ;;  %v75_v30 = vld [vmem:[#allocation3 + $0xf8] sm:$0xff] }
  0x41   :  { %v457_v45 = vadd.f32 %v351_v35, %v61_v31  ;;  %v458_v46 = vadd.f32 %v355_v36, %v62_v32  ;;  %v359_v47 = vrot.slane %v229_v37, %v663_v8  ;;  %v238_v50 = vrot.slane %v79_v44, %v660_v5 }
  0x42   :  { %487 = vst [vmem:[#allocation8 + $0x78] sm:$0xff] %v455_v39  ;;  %v460_v51 = vadd.f32 %v363_v41, %v64_v38  ;;  %v367_v52 = vrot.slane %v226_v42, %v663_v8  ;;  %v371_v53 = vrot.slane %v228_v43, %v663_v8  ;;  %v230_v54 = vcombine.high %v226_v42, %v226_v42 }
  0x43   :  { %489 = vst [vmem:[#allocation8 + $0x88] sm:$0xff] %v457_v45  ;;  %490 = vst [vmem:[#allocation8 + $0x90] sm:$0xff] %v458_v46  ;;  %v459_v55 = vadd.f32 %v359_v47, %v63_v40  ;;  %v254_v57 = vrot.slane %v238_v50, %v660_v5  ;;  %v246_v58 = vcombine.high %v238_v50, %v238_v50 }
  0x44   :  { %v231_v59 = vcombine.high %v79_v44, %v79_v44  ;;  %492 = vst [vmem:[#allocation8 + $0xa0] sm:$0xff] %v460_v51  ;;  %v461_v60 = vadd.f32 %v367_v52, %v65_v48  ;;  %v462_v61 = vadd.f32 %v371_v53, %v66_v49  ;;  %v375_v62 = vrot.slane %v230_v54, %v663_v8 }
  0x45   :  { %491 = vst [vmem:[#allocation8 + $0x98] sm:$0xff] %v459_v55  ;;  %v379_v0 = vrot.slane %v254_v57, %v663_v8  ;;  %v268_v1 = vrot.slane %v246_v58, %v660_v5  ;;  %v276_v2 = vcombine.high %v254_v57, %v254_v57 }
  0x46   :  { %v245_v3 = vrot.slane %v231_v59, %v660_v5  ;;  %493 = vst [vmem:[#allocation8 + $0xa8] sm:$0xff] %v461_v60  ;;  %494 = vst [vmem:[#allocation8 + $0xb0] sm:$0xff] %v462_v61  ;;  %v463_v4 = vadd.f32 %v375_v62, %v67_v56 }
  0x47   :  { %v464_v9 = vadd.f32 %v379_v0, %v68_v63  ;;  %v383_v10 = vrot.slane %v268_v1, %v663_v8  ;;  %v387_v11 = vrot.slane %v276_v2, %v663_v8  ;;  %v278_v12 = vcombine.high %v268_v1, %v268_v1 }
  0x48   :  { %495 = vst [vmem:[#allocation8 + $0xb8] sm:$0xff] %v463_v4  ;;  %v261_v14 = vrot.slane %v245_v3, %v660_v5  ;;  %v247_v15 = vcombine.high %v245_v3, %v245_v3 }
  0x49   :  { %496 = vst [vmem:[#allocation8 + $0xc0] sm:$0xff] %v464_v9  ;;  %v465_v16 = vadd.f32 %v383_v10, %v69_v6  ;;  %v466_v17 = vadd.f32 %v387_v11, %v70_v7  ;;  %v391_v18 = vrot.slane %v278_v12, %v663_v8 }
  0x4a   :  { %v395_v20 = vrot.slane %v261_v14, %v663_v8  ;;  %v275_v21 = vrot.slane %v247_v15, %v660_v5  ;;  %v277_v22 = vcombine.high %v261_v14, %v261_v14 }
  0x4b   :  { %497 = vst [vmem:[#allocation8 + $0xc8] sm:$0xff] %v465_v16  ;;  %498 = vst [vmem:[#allocation8 + $0xd0] sm:$0xff] %v466_v17  ;;  %v467_v23 = vadd.f32 %v391_v18, %v71_v13 }
  0x4c   :  { %v468_v26 = vadd.f32 %v395_v20, %v72_v19  ;;  %v399_v27 = vrot.slane %v275_v21, %v663_v8  ;;  %v403_v28 = vrot.slane %v277_v22, %v663_v8  ;;  %v279_v29 = vcombine.high %v275_v21, %v275_v21 }
  0x4d   :  { %499 = vst [vmem:[#allocation8 + $0xd8] sm:$0xff] %v467_v23 }
  0x4e   :  { %500 = vst [vmem:[#allocation8 + $0xe0] sm:$0xff] %v468_v26  ;;  %v469_v31 = vadd.f32 %v399_v27, %v73_v24  ;;  %v470_v32 = vadd.f32 %v403_v28, %v74_v25  ;;  %v407_v5 = vrot.slane %v279_v29, %v663_v8 }
  0x50   :  { %501 = vst [vmem:[#allocation8 + $0xe8] sm:$0xff] %v469_v31  ;;  %502 = vst [vmem:[#allocation8 + $0xf0] sm:$0xff] %v470_v32  ;;  %v471_v33 = vadd.f32 %v407_v5, %v75_v30 }
  0x52   :  { %503 = vst [vmem:[#allocation8 + $0xf8] sm:$0xff] %v471_v33 }
  0x53   :  { %587 = shalt.err (!%p584_p6)
}
  0x54   :  { %s588_s13 = scalar_lea.hbm %s738_s3, 4096 }
  0x55   :  { %p589_p7 = scmp.ne.s32.totalorder %s738_s3, %s588_s13  ;;  %p592_p8 = scmp.lt.u32.totalorder %s588_s13, %s738_s3 }
  0x57   :  { %p594_p9 = pnand %p592_p8, %p589_p7 }
  0x59   :  { %597 = shalt.err (!%p594_p9)
}
  0x5a   :  { %515 = dma.vmem_to_hbm [thread:$0]  %s510_s9, 4096, %s738_s3, [#allocation5], %s605_s21, %s605_s21, %s606_s22  }
  0x5b   :  { %602 = dma.done.wait [#allocation5], 4096  }
  0x5c   :  { %603 = vsyncadd [#allocation5], 4294963200 }
  0x5d   :  { %519 = vsyncpa [#allocation4], 1 }
  0x5e   :  { %520 = vsyncpa [#allocation7], 1 }
  0x5f   :  { %521 = vsyncpa [#allocation5], 1 }

</bundles_post_ra>
